<compile_context>
chip_gen: v5e
topology: v5e:2x2
jax: 0.10.0
libtpu: 0.0.40
codegen_flags: <defaults>
</compile_context>

<pallas_src>
import functools

import jax
import jax.numpy as jnp
from jax.experimental import pallas as pl
from jax.experimental.pallas import tpu as pltpu


# ----------------------------------------------------------------------------
# Fused kernel: encode (Linear+ReLU)* -> decode (Linear+ReLU)*, last Linear+Sigmoid
# ----------------------------------------------------------------------------
def _ae_fused_kernel(*refs, n_enc, n_dec):
    n_layers = n_enc + n_dec
    x_ref = refs[0]
    wb_refs = refs[1:1 + 2 * n_layers]          # (w0, b0, w1, b1, ...)
    enc_ref = refs[1 + 2 * n_layers]
    dec_ref = refs[2 + 2 * n_layers]

    def layer(h, w_ref, b_ref, act):
        y = jnp.dot(h, w_ref[...],
                    preferred_element_type=jnp.float32,
                    precision=jax.lax.Precision.HIGHEST)
        y = y + b_ref[...]                      # bias on the f32 accumulator
        if act == "relu":
            y = jnp.maximum(y, 0.0)
        elif act == "sigmoid":
            y = jax.nn.sigmoid(y)               # exp/recip go to the EUP slot
        return y

    h = x_ref[...].astype(jnp.float32)

    # encoder: Linear + ReLU for every layer
    for li in range(n_enc):
        h = layer(h, wb_refs[2 * li], wb_refs[2 * li + 1], "relu")
    enc_ref[...] = h.astype(enc_ref.dtype)

    # decoder: Linear + ReLU for all but last; last is Linear + Sigmoid
    for li in range(n_dec):
        act = "sigmoid" if li == n_dec - 1 else "relu"
        j = 2 * (n_enc + li)
        h = layer(h, wb_refs[j], wb_refs[j + 1], act)
    dec_ref[...] = h.astype(dec_ref.dtype)


# ----------------------------------------------------------------------------
# Wrapper: one fused pallas_call for the whole forward pass
# ----------------------------------------------------------------------------
def ae_forward(params, x, *, batch_tile=256):
    """Reproduces AE.forward: returns (encoded, decoded)."""
    enc_params = params["encode"]
    dec_params = params["decode"]
    n_enc, n_dec = len(enc_params), len(dec_params)
    B, d_in = x.shape
    d_enc = enc_params[-1][0].shape[1]
    d_out = dec_params[-1][0].shape[1]

    flat_wb = []
    for (w, b) in enc_params + dec_params:
        flat_wb.extend([w, b])

    kernel = functools.partial(_ae_fused_kernel, n_enc=n_enc, n_dec=n_dec)
    out_shape = (jax.ShapeDtypeStruct((B, d_enc), jnp.float32),
                 jax.ShapeDtypeStruct((B, d_out), jnp.float32))

    # Large batch: tile the batch dim (parallel across TCs on v7x), weights stay
    # VMEM-resident across grid steps (index_map always (0, 0)).
    if B >= 2 * batch_tile and B % batch_tile == 0 and batch_tile % 8 == 0:
        in_specs = [pl.BlockSpec((batch_tile, d_in), lambda i: (i, 0))]
        for (w, b) in enc_params + dec_params:
            in_specs.append(pl.BlockSpec(w.shape, lambda i: (0, 0)))
            in_specs.append(pl.BlockSpec(b.shape, lambda i: (0, 0)))
        out_specs = (pl.BlockSpec((batch_tile, d_enc), lambda i: (i, 0)),
                     pl.BlockSpec((batch_tile, d_out), lambda i: (i, 0)))
        return pl.pallas_call(
            kernel,
            out_shape=out_shape,
            grid=(B // batch_tile,),
            in_specs=in_specs,
            out_specs=out_specs,
            compiler_params=pltpu.CompilerParams(
                dimension_semantics=("parallel",)),
        )(x, *flat_wb)

    # Small batch: gridless call, everything as full-array VMEM blocks.
    vmem_spec = pl.BlockSpec(memory_space=pltpu.MemorySpace.VMEM)
    return pl.pallas_call(
        kernel,
        out_shape=out_shape,
        in_specs=[vmem_spec] * (1 + len(flat_wb)),
        out_specs=(vmem_spec, vmem_spec),
    )(x, *flat_wb)


# ----------------------------------------------------------------------------
# Parameter init (mimics torch.nn.Linear default: U[-1/sqrt(in), 1/sqrt(in)])
# ----------------------------------------------------------------------------
def init_ae_params(key, layers_size):
    """Weights stored as [in, out] (transposed vs PyTorch's [out, in])."""
    params = {"encode": [], "decode": []}
    for name, sizes in (("encode", layers_size[0]), ("decode", layers_size[1])):
        for i in range(len(sizes) - 1):
            fan_in, fan_out = sizes[i], sizes[i + 1]
            key, kw, kb = jax.random.split(key, 3)
            bound = 1.0 / jnp.sqrt(fan_in)
            w = jax.random.uniform(kw, (fan_in, fan_out), jnp.float32,
                                   minval=-bound, maxval=bound)
            b = jax.random.uniform(kb, (1, fan_out), jnp.float32,
                                   minval=-bound, maxval=bound)
            params[name].append((w, b))
    return params


# ----------------------------------------------------------------------------
# Plain-JAX reference (f32 HIGHEST precision, same as kernel)
# ----------------------------------------------------------------------------
def ae_forward_ref(params, x):
    hi = jax.lax.Precision.HIGHEST
    encoded = x
    for (w, b) in params["encode"]:
        encoded = jnp.maximum(jnp.dot(encoded, w, precision=hi) + b, 0.0)
    out = encoded
    n_dec = len(params["decode"])
    for i, (w, b) in enumerate(params["decode"]):
        y = jnp.dot(out, w, precision=hi) + b
        out = jax.nn.sigmoid(y) if i == n_dec - 1 else jnp.maximum(y, 0.0)
    return encoded, out


if __name__ == "__main__":
    # layers_size = (encoder_sizes, decoder_sizes), as the PyTorch ctor expects.
    layers_size = ([64, 32, 16], [16, 32, 64])

    key = jax.random.PRNGKey(0)
    key, kx_small, kx_big = jax.random.split(key, 3)
    params = init_ae_params(key, layers_size)

    # --- small batch: gridless fused kernel ---------------------------------
    batch = 8
    x = jax.random.uniform(kx_small, (batch, layers_size[0][0]), jnp.float32)
    encoded, decoded = ae_forward(params, x)
    (encoded, decoded) = jax.block_until_ready((encoded, decoded))

    enc_ref, dec_ref = ae_forward_ref(params, x)
    assert encoded.shape == (batch, layers_size[0][-1])
    assert decoded.shape == (batch, layers_size[1][-1])
    assert jnp.allclose(encoded, enc_ref, atol=1e-5, rtol=1e-5)
    assert jnp.allclose(decoded, dec_ref, atol=1e-5, rtol=1e-5)

    # --- larger batch: batch-tiled fused kernel (parallel grid axis) --------
    big_batch = 512
    xb = jax.random.uniform(kx_big, (big_batch, layers_size[0][0]), jnp.float32)
    enc_b, dec_b = ae_forward(params, xb, batch_tile=128)
    (enc_b, dec_b) = jax.block_until_ready((enc_b, dec_b))

    enc_b_ref, dec_b_ref = ae_forward_ref(params, xb)
    assert enc_b.shape == (big_batch, layers_size[0][-1])
    assert dec_b.shape == (big_batch, layers_size[1][-1])
    assert jnp.allclose(enc_b, enc_b_ref, atol=1e-5, rtol=1e-5)
    assert jnp.allclose(dec_b, dec_b_ref, atol=1e-5, rtol=1e-5)

    print("KERNEL_OK")
</pallas_src>

<mosaic_0001>
module attributes {stable_mosaic.version = 11 : i64} {
  func.func @_ae_fused_kernel(%arg0: memref<8x64xf32, #tpu.memory_space<vmem>>, %arg1: memref<64x32xf32, #tpu.memory_space<vmem>>, %arg2: memref<1x32xf32, #tpu.memory_space<vmem>>, %arg3: memref<32x16xf32, #tpu.memory_space<vmem>>, %arg4: memref<1x16xf32, #tpu.memory_space<vmem>>, %arg5: memref<16x32xf32, #tpu.memory_space<vmem>>, %arg6: memref<1x32xf32, #tpu.memory_space<vmem>>, %arg7: memref<32x64xf32, #tpu.memory_space<vmem>>, %arg8: memref<1x64xf32, #tpu.memory_space<vmem>>, %arg9: memref<8x16xf32, #tpu.memory_space<vmem>>, %arg10: memref<8x64xf32, #tpu.memory_space<vmem>>) attributes {dimension_semantics = [], scalar_prefetch = 0 : i64, scratch_operands = 0 : i64, tpu.core_type = #tpu.core_type<tc>} {
    %c0 = arith.constant 0 : index
    %c0_0 = arith.constant 0 : index
    %0 = vector.load %arg0[%c0, %c0_0] : memref<8x64xf32, #tpu.memory_space<vmem>>, vector<8x64xf32>
    %c0_1 = arith.constant 0 : index
    %c0_2 = arith.constant 0 : index
    %1 = vector.load %arg1[%c0_1, %c0_2] : memref<64x32xf32, #tpu.memory_space<vmem>>, vector<64x32xf32>
    %cst = arith.constant dense<0.000000e+00> : vector<8x32xf32>
    %2 = tpu.matmul %0, %1, %cst {dimension_numbers = #tpu.dot_dimension_numbers<[1], [0], [0], [1], [0, 0, 1, 1], [], []>, precision = #tpu.contract_precision<fp32>} : vector<8x64xf32>, vector<64x32xf32>, vector<8x32xf32> -> vector<8x32xf32>
    %c0_3 = arith.constant 0 : index
    %c0_4 = arith.constant 0 : index
    %3 = vector.load %arg2[%c0_3, %c0_4] : memref<1x32xf32, #tpu.memory_space<vmem>>, vector<1x32xf32>
    %4 = vector.broadcast %3 : vector<1x32xf32> to vector<8x32xf32>
    %5 = arith.addf %2, %4 : vector<8x32xf32>
    %cst_5 = arith.constant 0.000000e+00 : f32
    %6 = vector.broadcast %cst_5 : f32 to vector<8x32xf32>
    %7 = arith.maximumf %5, %6 : vector<8x32xf32>
    %c0_6 = arith.constant 0 : index
    %c0_7 = arith.constant 0 : index
    %8 = vector.load %arg3[%c0_6, %c0_7] : memref<32x16xf32, #tpu.memory_space<vmem>>, vector<32x16xf32>
    %cst_8 = arith.constant dense<0.000000e+00> : vector<8x16xf32>
    %9 = tpu.matmul %7, %8, %cst_8 {dimension_numbers = #tpu.dot_dimension_numbers<[1], [0], [0], [1], [0, 0, 1, 1], [], []>, precision = #tpu.contract_precision<fp32>} : vector<8x32xf32>, vector<32x16xf32>, vector<8x16xf32> -> vector<8x16xf32>
    %c0_9 = arith.constant 0 : index
    %c0_10 = arith.constant 0 : index
    %10 = vector.load %arg4[%c0_9, %c0_10] : memref<1x16xf32, #tpu.memory_space<vmem>>, vector<1x16xf32>
    %11 = vector.broadcast %10 : vector<1x16xf32> to vector<8x16xf32>
    %12 = arith.addf %9, %11 : vector<8x16xf32>
    %cst_11 = arith.constant 0.000000e+00 : f32
    %13 = vector.broadcast %cst_11 : f32 to vector<8x16xf32>
    %14 = arith.maximumf %12, %13 : vector<8x16xf32>
    %c0_12 = arith.constant 0 : index
    %c0_13 = arith.constant 0 : index
    %15 = vector.load %arg9[%c0_12, %c0_13] : memref<8x16xf32, #tpu.memory_space<vmem>>, vector<8x16xf32>
    tpu.vector_store %arg9[%c0_12, %c0_13], %14 {strides = array<i32>} : memref<8x16xf32, #tpu.memory_space<vmem>>, vector<8x16xf32>,
    %c0_14 = arith.constant 0 : index
    %c0_15 = arith.constant 0 : index
    %16 = vector.load %arg5[%c0_14, %c0_15] : memref<16x32xf32, #tpu.memory_space<vmem>>, vector<16x32xf32>
    %cst_16 = arith.constant dense<0.000000e+00> : vector<8x32xf32>
    %17 = tpu.matmul %14, %16, %cst_16 {dimension_numbers = #tpu.dot_dimension_numbers<[1], [0], [0], [1], [0, 0, 1, 1], [], []>, precision = #tpu.contract_precision<fp32>} : vector<8x16xf32>, vector<16x32xf32>, vector<8x32xf32> -> vector<8x32xf32>
    %c0_17 = arith.constant 0 : index
    %c0_18 = arith.constant 0 : index
    %18 = vector.load %arg6[%c0_17, %c0_18] : memref<1x32xf32, #tpu.memory_space<vmem>>, vector<1x32xf32>
    %19 = vector.broadcast %18 : vector<1x32xf32> to vector<8x32xf32>
    %20 = arith.addf %17, %19 : vector<8x32xf32>
    %cst_19 = arith.constant 0.000000e+00 : f32
    %21 = vector.broadcast %cst_19 : f32 to vector<8x32xf32>
    %22 = arith.maximumf %20, %21 : vector<8x32xf32>
    %c0_20 = arith.constant 0 : index
    %c0_21 = arith.constant 0 : index
    %23 = vector.load %arg7[%c0_20, %c0_21] : memref<32x64xf32, #tpu.memory_space<vmem>>, vector<32x64xf32>
    %cst_22 = arith.constant dense<0.000000e+00> : vector<8x64xf32>
    %24 = tpu.matmul %22, %23, %cst_22 {dimension_numbers = #tpu.dot_dimension_numbers<[1], [0], [0], [1], [0, 0, 1, 1], [], []>, precision = #tpu.contract_precision<fp32>} : vector<8x32xf32>, vector<32x64xf32>, vector<8x64xf32> -> vector<8x64xf32>
    %c0_23 = arith.constant 0 : index
    %c0_24 = arith.constant 0 : index
    %25 = vector.load %arg8[%c0_23, %c0_24] : memref<1x64xf32, #tpu.memory_space<vmem>>, vector<1x64xf32>
    %26 = vector.broadcast %25 : vector<1x64xf32> to vector<8x64xf32>
    %27 = arith.addf %24, %26 : vector<8x64xf32>
    %28 = arith.negf %27 : vector<8x64xf32>
    %29 = math.exp %28 : vector<8x64xf32>
    %cst_25 = arith.constant 1.000000e+00 : f32
    %30 = vector.broadcast %cst_25 : f32 to vector<8x64xf32>
    %31 = arith.addf %30, %29 : vector<8x64xf32>
    %32 = arith.divf %30, %31 : vector<8x64xf32>
    %c0_26 = arith.constant 0 : index
    %c0_27 = arith.constant 0 : index
    %33 = vector.load %arg10[%c0_26, %c0_27] : memref<8x64xf32, #tpu.memory_space<vmem>>, vector<8x64xf32>
    tpu.vector_store %arg10[%c0_26, %c0_27], %32 {strides = array<i32>} : memref<8x64xf32, #tpu.memory_space<vmem>>, vector<8x64xf32>,
    return
  }
}

</mosaic_0001>

<bundles_post_ra>
// kernel: tpu_custom_call.1
= control target key start
LH: loop header
LB: loop body
LE: loop exit
PB: predicated region body
PF: predicated region fallthrough
CT: control target
= control target key end

     0   :  { %16 = vsyncpa [#allocation3], 0  ;;  %s1194_s0 = inlined_call_operand.vmem [shape: f32[8,64], index: 0, kind: input, shape index: {}]   ;;  %s1195_s1 = inlined_call_operand.vmem [shape: f32[64,32], index: 1, kind: input, shape index: {}]   ;;  %s1196_s2 = inlined_call_operand.vmem [shape: f32[1,32], index: 2, kind: input, shape index: {}]   ;;  %s1197_s3 = inlined_call_operand.vmem [shape: f32[32,16], index: 3, kind: input, shape index: {}]   ;;  %s1198_s4 = inlined_call_operand.vmem [shape: f32[1,16], index: 4, kind: input, shape index: {}]   ;;  %s1199_s5 = inlined_call_operand.vmem [shape: f32[16,32], index: 5, kind: input, shape index: {}]   ;;  %s1200_s6 = inlined_call_operand.vmem [shape: f32[1,32], index: 6, kind: input, shape index: {}]   ;;  %s1201_s7 = inlined_call_operand.vmem [shape: f32[32,64], index: 7, kind: input, shape index: {}]   ;;  %s1202_s8 = inlined_call_operand.vmem [shape: f32[1,64], index: 8, kind: input, shape index: {}]   ;;  %s1203_s9 = inlined_call_operand.hbm [shape: f32[8,16], index: 9, kind: output, shape index: {0}]   ;;  %s1204_s10 = inlined_call_operand.hbm [shape: f32[8,64], index: 10, kind: output, shape index: {1}]  }
   0x1   :  { %v44_v0 = vld [vmem:[%s1195_s1 + $0x38] sm:$0xff]  ;;  %v43_v1 = vld [vmem:[%s1195_s1 + $0x30] sm:$0xff]  ;;  %v42_v2 = vld [vmem:[%s1195_s1 + $0x28] sm:$0xff] }
   0x2   :  { %v1037_v3 = vand.u32 4294901760, %v44_v0  ;;  %v1039_v4 = vand.u32 4294901760, %v43_v1  ;;  %v1041_v5 = vand.u32 4294901760, %v42_v2  ;;  %v41_v6 = vld [vmem:[%s1195_s1 + $0x20] sm:$0xff]  ;;  %v40_v7 = vld [vmem:[%s1195_s1 + $0x18] sm:$0xff]  ;;  %v39_v8 = vld [vmem:[%s1195_s1 + $0x10] sm:$0xff] }
   0x3   :  { %v1052_v9 = vand.u32 4294901760, %v41_v6  ;;  %v1054_v10 = vand.u32 4294901760, %v40_v7  ;;  %v1056_v11 = vand.u32 4294901760, %v39_v8  ;;  %v38_v12 = vld [vmem:[%s1195_s1 + $0x8] sm:$0xff]  ;;  %v37_v13 = vld [vmem:[%s1195_s1] sm:$0xff] }
   0x4   :  { %62 = vmatpush.msra.mxu0 %v1037_v3  ;;  %v1066_v14 = vsub.f32 %v44_v0, %v1037_v3  ;;  %v1069_v15 = vsub.f32 %v43_v1, %v1039_v4  ;;  %v1072_v16 = vsub.f32 %v42_v2, %v1041_v5  ;;  %194 = vmatpush.msra.mxu3 %v1037_v3  ;;  %v1075_v17 = vand.u32 4294901760, %v38_v12 }
   0x5   :  { %v1078_v18 = vsub.f32 %v41_v6, %v1052_v9  ;;  %v1081_v19 = vsub.f32 %v40_v7, %v1054_v10  ;;  %v1084_v20 = vsub.f32 %v39_v8, %v1056_v11  ;;  %v1091_v24 = vand.u32 4294901760, %v37_v13 }
   0x6   :  { %64 = vmatpush.msra.mxu0 %v1039_v4  ;;  %v96_v21 = vand.u32 4294901760, %v1066_v14  ;;  %v102_v22 = vand.u32 4294901760, %v1069_v15  ;;  %157 = vmatpush.msra.mxu2 %v1066_v14  ;;  %v108_v23 = vand.u32 4294901760, %v1072_v16 }
   0x7   :  { %17 = vsyncpa [#allocation5], 0  ;;  %v114_v25 = vand.u32 4294901760, %v1078_v18  ;;  %196 = vmatpush.msra.mxu3 %v1039_v4  ;;  %v1096_v26 = vsub.f32 %v38_v12, %v1075_v17  ;;  %v120_v30 = vand.u32 4294901760, %v1081_v19  ;;  %v126_v31 = vand.u32 4294901760, %v1084_v20  ;;  %v36_v32 = vld [vmem:[%s1194_s0] sm:$0xff] }
   0x8   :  { %v97_v27 = vsub.f32 %v1066_v14, %v96_v21  ;;  %66 = vmatpush.msra.mxu0 %v1041_v5  ;;  %v103_v28 = vsub.f32 %v1069_v15, %v102_v22  ;;  %v109_v29 = vsub.f32 %v1072_v16, %v108_v23  ;;  %160 = vmatpush.msra.mxu2 %v1069_v15  ;;  %vm49_vm0 = vcmask 523264   ;;  %v294_v55 = vld [vmem:[%s1197_s3 + $0x18] sm:$0xff]  ;;  %v293_v57 = vld [vmem:[%s1197_s3 + $0x10] sm:$0xff]  ;;  %v292_v60 = vld [vmem:[%s1197_s3 + $0x8] sm:$0xff]  ;;  %s883_s0 = sshll.u32 %s1203_s9, 4  ;;  %s971_s30 = smov [#allocation2]   ;;  %s884_s0 = int_to_ptr.hbm [resolvable:$true] %s883_s0 }
   0x9   :  { %198 = vmatpush.msra.mxu3 %v1041_v5  ;;  %v115_v35 = vsub.f32 %v1078_v18, %v114_v25  ;;  %v137_v36 = vsub.f32 %v37_v13, %v1091_v24  ;;  %v121_v38 = vsub.f32 %v1081_v19, %v120_v30  ;;  %v132_v39 = vand.u32 4294901760, %v1096_v26  ;;  %v291_v0 = vld [vmem:[%s1197_s3] sm:$0xff]  ;;  %s881_s11 = sshll.u32 %s971_s30, 4  ;;  %s894_s16 = sshll.u32 %s1204_s10, 4  ;;  %s882_s11 = int_to_ptr.vmem [resolvable:$true] %s881_s11  ;;  %s895_s16 = int_to_ptr.hbm [resolvable:$true] %s894_s16 }
   0xa   :  { %v98_v33 = vand.u32 4294901760, %v97_v27  ;;  %v104_v34 = vand.u32 4294901760, %v103_v28  ;;  %68 = vmatpush.msra.mxu0 %v1052_v9  ;;  %163 = vmatpush.msra.mxu2 %v1072_v16  ;;  %v110_v37 = vand.u32 4294901760, %v109_v29  ;;  %v51_v40 = vsel %vm49_vm0, %v36_v32, 0  ;;  %v911_v15 = vld [vmem:[%s1196_s2] ss:$0 sm:$0xff] }
   0xb   :  { %200 = vmatpush.msra.mxu3 %v1052_v9  ;;  %v77_v41 = vand.u32 4294901760, %v51_v40  ;;  %v116_v42 = vand.u32 4294901760, %v115_v35  ;;  %v127_v43 = vsub.f32 %v1084_v20, %v126_v31  ;;  %v138_v44 = vand.u32 4294901760, %v137_v36  ;;  %v492_v35 = vld [vmem:[%s1199_s5 + $0x8] sm:$0xff] }
   0xc   :  { %99 = vmatpush.msra.mxu1 %v98_v33  ;;  %70 = vmatpush.msra.mxu0 %v1054_v10  ;;  %v122_v46 = vand.u32 4294901760, %v121_v38  ;;  %v133_v47 = vsub.f32 %v1096_v26, %v132_v39  ;;  %v315_v56 = vand.u32 4294901760, %v294_v55  ;;  %v317_v59 = vand.u32 4294901760, %v293_v57 }
   0xd   :  { %166 = vmatpush.msra.mxu2 %v1078_v18  ;;  %202 = vmatpush.msra.mxu3 %v1054_v10  ;;  %v78_v45 = vsub.f32 %v51_v40, %v77_v41  ;;  %v128_v49 = vand.u32 4294901760, %v127_v43  ;;  %v139_v50 = vsub.f32 %v137_v36, %v138_v44  ;;  %v319_v63 = vand.u32 4294901760, %v292_v60 }
   0xe   :  { %105 = vmatpush.msra.mxu1 %v104_v34  ;;  %72 = vmatpush.msra.mxu0 %v1056_v11  ;;  %v134_v52 = vand.u32 4294901760, %v133_v47  ;;  %v345_v58 = vsub.f32 %v294_v55, %v315_v56  ;;  %v351_v62 = vsub.f32 %v293_v57, %v317_v59  ;;  %vm299_vm1 = vcmask 261120   ;;  %v912_v47 = vld [vmem:[%s1198_s4] ss:$0 sm:$0xff] }
   0xf   :  { %169 = vmatpush.msra.mxu2 %v1081_v19  ;;  %204 = vmatpush.msra.mxu3 %v1056_v11  ;;  %v79_v48 = vand.u32 4294901760, %v78_v45  ;;  %v140_v54 = vand.u32 4294901760, %v139_v50  ;;  %vm489_vm2 = vcmask 130048  }
  0x10   :  { %111 = vmatpush.msra.mxu1 %v110_v37  ;;  %74 = vmatpush.msra.mxu0 %v1075_v17  ;;  %v346_v61 = vand.u32 4294901760, %v345_v58  ;;  %v352_v2 = vand.u32 4294901760, %v351_v62  ;;  %v491_v37 = vld [vmem:[%s1199_s5] sm:$0xff] }
  0x11   :  { %172 = vmatpush.msra.mxu2 %v1084_v20  ;;  %206 = vmatpush.msra.mxu3 %v1075_v17  ;;  %v80_v51 = vsub.f32 %v78_v45, %v79_v48 }
  0x12   :  { %117 = vmatpush.msra.mxu1 %v116_v42  ;;  %76 = vmatpush.msra.mxu0 %v1091_v24  ;;  %v347_v1 = vsub.f32 %v345_v58, %v346_v61  ;;  %v353_v6 = vsub.f32 %v351_v62, %v352_v2 }
  0x13   :  { %175 = vmatpush.msra.mxu2 %v1096_v26  ;;  %208 = vmatpush.msra.mxu3 %v1091_v24  ;;  %v81_v53 = vand.u32 4294901760, %v80_v51 }
  0x14   :  { %227 = vmatpush.msrb.mxu0 %v96_v21  ;;  %123 = vmatpush.msra.mxu1 %v122_v46 }
  0x15   :  { %178 = vmatpush.msra.mxu2 %v137_v36  ;;  %212 = vmatmul.f32.vlgmr.msra.gmra.mxu3 %v79_v48  ;;  %v514_v36 = vand.u32 4294901760, %v492_v35 }
  0x16   :  { %231 = vmatpush.msrb.mxu0 %v102_v22  ;;  %129 = vmatpush.msra.mxu1 %v128_v49 }
  0x17   :  { %181 = vmatmul.f32.vlgmr.msra.gmra.mxu2 %v78_v45  ;;  %82 = vmatmul.f32.vlgmr.msra.gmra.mxu0 %v81_v53  ;;  %v542_v38 = vsub.f32 %v492_v35, %v514_v36 }
  0x18   :  { %235 = vmatpush.msrb.mxu0 %v108_v23  ;;  %135 = vmatpush.msra.mxu1 %v134_v52 }
  0x19   :  { %316 = vmatpush.msrb.mxu2 %v315_v56  ;;  %v543_v40 = vand.u32 4294901760, %v542_v38 }
  0x1a   :  { %239 = vmatpush.msrb.mxu0 %v114_v25  ;;  %141 = vmatpush.msra.mxu1 %v140_v54 }
  0x1b   :  { %143 = vmatmul.f32.vlgmr.msra.gmra.mxu1 %v77_v41  ;;  %318 = vmatpush.msrb.mxu2 %v317_v59  ;;  %v544_v42 = vsub.f32 %v542_v38, %v543_v40 }
  0x1c   :  { %270 = vmatpush.msrb.mxu1 %v1037_v3  ;;  %243 = vmatpush.msrb.mxu0 %v120_v30  ;;  %v357_v3 = vsub.f32 %v292_v60, %v319_v63 }
  0x1d   :  { %320 = vmatpush.msrb.mxu2 %v319_v63 }
  0x1e   :  { %272 = vmatpush.msrb.mxu1 %v1039_v4  ;;  %247 = vmatpush.msrb.mxu0 %v126_v31  ;;  %v321_v4 = vand.u32 4294901760, %v291_v0  ;;  %v358_v7 = vand.u32 4294901760, %v357_v3 }
  0x20   :  { %274 = vmatpush.msrb.mxu1 %v1041_v5  ;;  %251 = vmatpush.msrb.mxu0 %v132_v39  ;;  %v348_v5 = vand.u32 4294901760, %v347_v1  ;;  %v363_v8 = vsub.f32 %v291_v0, %v321_v4  ;;  %v516_v39 = vand.u32 4294901760, %v491_v37 }
  0x21   :  { %322 = vmatpush.msrb.mxu2 %v321_v4 }
  0x22   :  { %276 = vmatpush.msrb.mxu1 %v1052_v9  ;;  %255 = vmatpush.msrb.mxu0 %v138_v44  ;;  %v354_v9 = vand.u32 4294901760, %v353_v6  ;;  %v545_v44 = vand.u32 4294901760, %v544_v42 }
  0x23   :  { %257 = vmatmul.f32.vlgmr.msrb.gmra.mxu0 %v77_v41  ;;  %349 = vmatpush.msrb.mxu3 %v348_v5  ;;  %v662_v5 = vld [vmem:[%s1201_s7 + $0x10] sm:$0xff] }
  0x24   :  { %278 = vmatpush.msrb.mxu1 %v1054_v10  ;;  %445 = vmatpush.msra.mxu0 %v346_v61  ;;  %v359_v10 = vsub.f32 %v357_v3, %v358_v7 }
  0x25   :  { %387 = vmatpush.msra.mxu2 %v345_v58  ;;  %355 = vmatpush.msrb.mxu3 %v354_v9 }
  0x26   :  { %280 = vmatpush.msrb.mxu1 %v1056_v11  ;;  %449 = vmatpush.msra.mxu0 %v352_v2  ;;  %v364_v11 = vand.u32 4294901760, %v363_v8  ;;  %v360_v12 = vand.u32 4294901760, %v359_v10 }
  0x27   :  { %390 = vmatpush.msra.mxu2 %v351_v62 }
  0x28   :  { %282 = vmatpush.msrb.mxu1 %v1075_v17  ;;  %453 = vmatpush.msra.mxu0 %v358_v7  ;;  %v365_v13 = vsub.f32 %v363_v8, %v364_v11  ;;  %v685_v7 = vand.u32 4294901760, %v662_v5 }
  0x29   :  { %361 = vmatpush.msrb.mxu3 %v360_v12  ;;  %393 = vmatpush.msra.mxu2 %v357_v3  ;;  %v663_v3 = vld [vmem:[%s1201_s7 + $0x18] sm:$0xff]  ;;  %v660_v12 = vld [vmem:[%s1201_s7] sm:$0xff] }
  0x2a   :  { %284 = vmatpush.msrb.mxu1 %v1091_v24  ;;  %457 = vmatpush.msra.mxu0 %v364_v11  ;;  %v366_v14 = vand.u32 4294901760, %v365_v13  ;;  %v719_v10 = vsub.f32 %v662_v5, %v685_v7 }
  0x2b   :  { %286 = vmatmul.f32.vlgmr.msrb.gmra.mxu1 %v77_v41  ;;  %396 = vmatpush.msra.mxu2 %v363_v8  ;;  %v548_v41 = vsub.f32 %v491_v37, %v516_v39  ;;  %v661_v8 = vld [vmem:[%s1201_s7 + $0x8] sm:$0xff] }
  0x2c   :  { %476 = vmatpush.msra.mxu1 %v315_v56  ;;  %367 = vmatpush.msrb.mxu3 %v366_v14  ;;  %v687_v11 = vand.u32 4294901760, %v661_v8  ;;  %v720_v14 = vand.u32 4294901760, %v719_v10 }
  0x2d   :  { %574 = vmatpush.msrb.mxu0 %v542_v38  ;;  %v549_v43 = vand.u32 4294901760, %v548_v41 }
  0x2e   :  { %478 = vmatpush.msra.mxu1 %v317_v59  ;;  %416 = vmatpush.msra.mxu3 %v315_v56 }
  0x2f   :  { %577 = vmatpush.msrb.mxu0 %v548_v41  ;;  %v550_v45 = vsub.f32 %v548_v41, %v549_v43 }
  0x30   :  { %480 = vmatpush.msra.mxu1 %v319_v63  ;;  %418 = vmatpush.msra.mxu3 %v317_v59 }
  0x31   :  { %v551_v46 = vand.u32 4294901760, %v550_v45 }
  0x32   :  { %482 = vmatpush.msra.mxu1 %v321_v4  ;;  %420 = vmatpush.msra.mxu3 %v319_v63 }
  0x34   :  { %422 = vmatpush.msra.mxu3 %v321_v4  ;;  %599 = vmatpush.msrb.mxu1 %v514_v36  ;;  %v683_v4 = vand.u32 4294901760, %v663_v3 }
  0x36   :  { %601 = vmatpush.msrb.mxu1 %v516_v39  ;;  %v713_v6 = vsub.f32 %v663_v3, %v683_v4 }
  0x38   :  { %v714_v9 = vand.u32 4294901760, %v713_v6 }
  0x3a   :  { %v715_v13 = vsub.f32 %v713_v6, %v714_v9 }
  0x94   :  { %v83_v16 = vpop.f32.mrf.mxu0 }
  0x95   :  { %v84_v17 = vadd.f32 %v911_v15, %v83_v16  ;;  %v725_v15 = vsub.f32 %v661_v8, %v687_v11  ;;  %v689_v16 = vand.u32 4294901760, %v660_v12 }
  0x98   :  { %v144_v18 = vpop.f32.mrf.mxu1  ;;  %v213_v22 = vpop.f32.mrf.mxu3 }
  0x99   :  { %v145_v20 = vadd.f32 %v144_v18, %v84_v17  ;;  %v716_v17 = vand.u32 4294901760, %v715_v13  ;;  %v721_v18 = vsub.f32 %v719_v10, %v720_v14 }
  0x9a   :  { %v182_v19 = vpop.f32.mrf.mxu2 }
  0x9b   :  { %v183_v21 = vadd.f32 %v182_v19, %v145_v20  ;;  %v726_v19 = vand.u32 4294901760, %v725_v15  ;;  %v731_v20 = vsub.f32 %v660_v12, %v689_v16 }
  0x9d   :  { %v214_v23 = vadd.f32 %v213_v22, %v183_v21  ;;  %v722_v21 = vand.u32 4294901760, %v721_v18  ;;  %v727_v22 = vsub.f32 %v725_v15, %v726_v19 }
  0xa0   :  { %v258_v24 = vpop.f32.mrf.mxu0 }
  0xa1   :  { %v259_v25 = vadd.f32 %v258_v24, %v214_v23  ;;  %v732_v23 = vand.u32 4294901760, %v731_v20  ;;  %v728_v24 = vand.u32 4294901760, %v727_v22 }
  0xa8   :  { %v287_v26 = vpop.f32.mrf.mxu1 }
  0xa9   :  { %v288_v27 = vadd.f32 %v287_v26, %v259_v25  ;;  %v733_v25 = vsub.f32 %v731_v20, %v732_v23 }
  0xab   :  { %v290_v28 = vmax.f32 %v288_v27, 0.0  ;;  %v734_v26 = vand.u32 4294901760, %v733_v25  ;;  %v913_v27 = vld [vmem:[%s1200_s6] ss:$0 sm:$0xff] }
  0xad   :  { %v301_v29 = vsel %vm299_vm1, %v290_v28, 0 }
  0xae   :  { %v323_v30 = vand.u32 4294901760, %v301_v29 }
  0xb0   :  { %v324_v31 = vsub.f32 %v301_v29, %v323_v30  ;;  %369 = vmatmul.f32.vlgmr.msrb.gmra.mxu3 %v323_v30  ;;  %459 = vmatmul.f32.vlgmr.msra.gmra.mxu0 %v323_v30 }
  0xb1   :  { %484 = vmatmul.f32.vlgmr.msra.gmra.mxu1 %v323_v30  ;;  %546 = vmatpush.msrb.mxu3 %v545_v44 }
  0xb2   :  { %v325_v32 = vand.u32 4294901760, %v324_v31  ;;  %684 = vmatpush.msra.mxu0 %v683_v4  ;;  %717 = vmatpush.msra.mxu1 %v716_v17 }
  0xb3   :  { %552 = vmatpush.msrb.mxu3 %v551_v46 }
  0xb4   :  { %v326_v33 = vsub.f32 %v324_v31, %v325_v32  ;;  %686 = vmatpush.msra.mxu0 %v685_v7  ;;  %723 = vmatpush.msra.mxu1 %v722_v21 }
  0xb6   :  { %v327_v34 = vand.u32 4294901760, %v326_v33  ;;  %688 = vmatpush.msra.mxu0 %v687_v11  ;;  %729 = vmatpush.msra.mxu1 %v728_v24 }
  0xb8   :  { %328 = vmatmul.f32.vlgmr.msrb.gmra.mxu2 %v327_v34  ;;  %426 = vmatmul.f32.vlgmr.msra.gmra.mxu3 %v325_v32 }
  0xb9   :  { %515 = vmatpush.msrb.mxu2 %v514_v36  ;;  %651 = vmatpush.msra.mxu3 %v514_v36 }
  0xba   :  { %690 = vmatpush.msra.mxu0 %v689_v16  ;;  %735 = vmatpush.msra.mxu1 %v734_v26 }
  0xbb   :  { %517 = vmatpush.msrb.mxu2 %v516_v39  ;;  %653 = vmatpush.msra.mxu3 %v516_v39 }
  0xc0   :  { %399 = vmatmul.f32.vlgmr.msra.gmra.mxu2 %v324_v31 }
  0xc1   :  { %626 = vmatpush.msra.mxu2 %v543_v40 }
  0xc3   :  { %630 = vmatpush.msra.mxu2 %v549_v43 }
 0x12d   :  { %v460_v56 = vpop.f32.mrf.mxu0 }
 0x12e   :  { %v485_v58 = vpop.f32.mrf.mxu1 }
 0x133   :  { %v370_v48 = vpop.f32.mrf.mxu3 }
 0x13b   :  { %v329_v49 = vpop.f32.mrf.mxu2  ;;  %v427_v54 = vpop.f32.mrf.mxu3 }
 0x13c   :  { %v330_v50 = vadd.f32 %v912_v47, %v329_v49  ;;  %v914_v47 = vld [vmem:[%s1202_s8] ss:$0 sm:$0xff]  ;;  %s972_s8 = smov [#allocation4]  }
 0x13d   :  { %s892_s9 = sshll.u32 %s972_s8, 4  ;;  %s893_s9 = int_to_ptr.vmem [resolvable:$true] %s892_s9 }
 0x13e   :  { %v371_v51 = vadd.f32 %v370_v48, %v330_v50 }
 0x143   :  { %v400_v52 = vpop.f32.mrf.mxu2 }
 0x144   :  { %v401_v53 = vadd.f32 %v400_v52, %v371_v51 }
 0x146   :  { %v428_v55 = vadd.f32 %v427_v54, %v401_v53 }
 0x148   :  { %v461_v57 = vadd.f32 %v460_v56, %v428_v55 }
 0x14a   :  { %v486_v59 = vadd.f32 %v485_v58, %v461_v57 }
 0x14c   :  { %v488_v60 = vmax.f32 %v486_v59, 0.0 }
 0x14e   :  { %v498_v61 = vsel %vm489_vm2, %v488_v60, 0  ;;  %490 = vst.msk [vmem:[#allocation2] sm:$0xff] %vm489_vm2, %v488_v60 }
 0x14f   :  { %v518_v62 = vand.u32 4294901760, %v498_v61  ;;  %886 = dma.vmem_to_hbm [thread:$0]  %s882_s11, 128, %s884_s0, [#allocation3]  }
 0x151   :  { %554 = vmatmul.f32.vlgmr.msrb.gmra.mxu3 %v518_v62  ;;  %v519_v63 = vsub.f32 %v498_v61, %v518_v62 }
 0x152   :  { %784 = vmatpush.msrb.mxu3 %v683_v4 }
 0x153   :  { %580 = vmatmul.f32.vlgmr.msrb.gmra.mxu0 %v519_v63  ;;  %v520_v0 = vand.u32 4294901760, %v519_v63 }
 0x154   :  { %786 = vmatpush.msrb.mxu3 %v685_v7  ;;  %813 = vmatpush.msrb.mxu0 %v714_v9 }
 0x155   :  { %605 = vmatmul.f32.vlgmr.msrb.gmra.mxu1 %v520_v0  ;;  %v521_v1 = vsub.f32 %v519_v63, %v520_v0 }
 0x156   :  { %788 = vmatpush.msrb.mxu3 %v687_v11  ;;  %817 = vmatpush.msrb.mxu0 %v720_v14 }
 0x157   :  { %v522_v2 = vand.u32 4294901760, %v521_v1  ;;  %844 = vmatpush.msrb.mxu1 %v683_v4 }
 0x158   :  { %790 = vmatpush.msrb.mxu3 %v689_v16  ;;  %821 = vmatpush.msrb.mxu0 %v726_v19 }
 0x159   :  { %523 = vmatmul.f32.vlgmr.msrb.gmra.mxu2 %v522_v2  ;;  %655 = vmatmul.f32.vlgmr.msra.gmra.mxu3 %v518_v62 }
 0x15a   :  { %755 = vmatpush.msrb.mxu2 %v713_v6  ;;  %825 = vmatpush.msrb.mxu0 %v732_v23 }
 0x15b   :  { %846 = vmatpush.msrb.mxu1 %v685_v7 }
 0x15c   :  { %758 = vmatpush.msrb.mxu2 %v719_v10 }
 0x15d   :  { %848 = vmatpush.msrb.mxu1 %v687_v11 }
 0x15e   :  { %761 = vmatpush.msrb.mxu2 %v725_v15 }
 0x15f   :  { %850 = vmatpush.msrb.mxu1 %v689_v16 }
 0x160   :  { %764 = vmatpush.msrb.mxu2 %v731_v20 }
 0x161   :  { %632 = vmatmul.f32.vlgmr.msra.gmra.mxu2 %v518_v62 }
 0x1d0   :  { %v581_v32 = vpop.f32.mrf.mxu0 }
 0x1d2   :  { %v606_v34 = vpop.f32.mrf.mxu1 }
 0x1d4   :  { %v555_v28 = vpop.f32.mrf.mxu3 }
 0x1dc   :  { %v524_v29 = vpop.f32.mrf.mxu2  ;;  %v656_v38 = vpop.f32.mrf.mxu3 }
 0x1dd   :  { %v525_v30 = vadd.f32 %v913_v27, %v524_v29 }
 0x1df   :  { %v556_v31 = vadd.f32 %v555_v28, %v525_v30 }
 0x1e1   :  { %v582_v33 = vadd.f32 %v581_v32, %v556_v31 }
 0x1e3   :  { %v607_v35 = vadd.f32 %v606_v34, %v582_v33 }
 0x1e4   :  { %v633_v36 = vpop.f32.mrf.mxu2 }
 0x1e5   :  { %v634_v37 = vadd.f32 %v633_v36, %v607_v35 }
 0x1e7   :  { %v657_v39 = vadd.f32 %v656_v38, %v634_v37 }
 0x1e9   :  { %v659_v40 = vmax.f32 %v657_v39, 0.0 }
 0x1eb   :  { %v669_v41 = vsel %vm299_vm1, %v659_v40, 0 }
 0x1ec   :  { %v691_v42 = vand.u32 4294901760, %v669_v41 }
 0x1ee   :  { %v692_v43 = vsub.f32 %v669_v41, %v691_v42  ;;  %737 = vmatmul.f32.vlgmr.msra.gmra.mxu1 %v691_v42 }
 0x1f0   :  { %767 = vmatmul.f32.vlgmr.msrb.gmra.mxu2 %v692_v43  ;;  %v693_v44 = vand.u32 4294901760, %v692_v43 }
 0x1f2   :  { %794 = vmatmul.f32.vlgmr.msrb.gmra.mxu3 %v693_v44  ;;  %v694_v45 = vsub.f32 %v692_v43, %v693_v44 }
 0x1f4   :  { %v695_v46 = vand.u32 4294901760, %v694_v45 }
 0x1f6   :  { %696 = vmatmul.f32.vlgmr.msra.gmra.mxu0 %v695_v46  ;;  %852 = vmatmul.f32.vlgmr.msrb.gmra.mxu1 %v691_v42 }
 0x1fe   :  { %827 = vmatmul.f32.vlgmr.msrb.gmra.mxu0 %v691_v42 }
 0x26b   :  { %v738_v48 = vpop.f32.mrf.mxu1 }
 0x273   :  { %v697_v49 = vpop.f32.mrf.mxu0  ;;  %v768_v52 = vpop.f32.mrf.mxu2 }
 0x274   :  { %v698_v50 = vadd.f32 %v914_v47, %v697_v49  ;;  %v853_v58 = vpop.f32.mrf.mxu1 }
 0x275   :  { %v795_v54 = vpop.f32.mrf.mxu3 }
 0x276   :  { %v739_v51 = vadd.f32 %v738_v48, %v698_v50 }
 0x278   :  { %v769_v53 = vadd.f32 %v768_v52, %v739_v51 }
 0x27a   :  { %v796_v55 = vadd.f32 %v795_v54, %v769_v53 }
 0x27b   :  { %v828_v56 = vpop.f32.mrf.mxu0 }
 0x27c   :  { %v829_v57 = vadd.f32 %v828_v56, %v796_v55 }
 0x27e   :  { %v854_v59 = vadd.f32 %v853_v58, %v829_v57 }
 0x280   :  { %v908_v60 = vmul.f32 -1.442695, %v854_v59 }
 0x282   :  { %915 = vpow2.f32 %v908_v60 }
 0x288   :  { %v916_v61 = vpop.eup %915 }
 0x289   :  { %v859_v62 = vadd.f32 1.0, %v916_v61 }
 0x28b   :  { %917 = vrcp.f32 %v859_v62  ;;  %v871_v2 = vand.u32 2147483648, %v859_v62  ;;  %v869_v4 = vand.u32 2147483647, %v859_v62  ;;  %vm865_vm4 = vweird.f32 %v859_v62 }
 0x28d   :  { %v872_v6 = vor.u32 1.1754944e-38, %v871_v2  ;;  %vm870_vm6 = vcmp.eq.f32.partialorder %v869_v4, 8.507059e+37 }
 0x291   :  { %v918_v63 = vpop.eup %917 }
 0x292   :  { %v861_v0 = vmul.f32 %v918_v63, %v859_v62  ;;  %vm866_vm3 = vweird.f32 %v918_v63 }
 0x293   :  { %vm867_vm5 = vmor %vm865_vm4, %vm866_vm3 }
 0x294   :  { %v862_v1 = vsub.f32 1.0, %v861_v0 }
 0x296   :  { %v863_v3 = vmul.f32 %v918_v63, %v862_v1 }
 0x298   :  { %v864_v5 = vadd.f32 %v918_v63, %v863_v3 }
 0x29a   :  { %v868_v7 = vsel %vm867_vm5, %v918_v63, %v864_v5 }
 0x29b   :  { %v873_v8 = vsel %vm870_vm6, %v872_v6, %v868_v7 }
 0x29c   :  { %875 = vst.msk [vmem:[#allocation4] sm:$0xff] %vm49_vm0, %v873_v8 }
 0x29d   :  { %897 = dma.vmem_to_hbm [thread:$0]  %s893_s9, 128, %s895_s16, [#allocation5]  }
 0x29e   :  { %967 = dma.done.wait [#allocation3], 128  }
 0x29f   :  { %968 = vsyncadd [#allocation3], 4294967168 }
 0x2a0   :  { %969 = dma.done.wait [#allocation5], 128  }
 0x2a1   :  { %970 = vsyncadd [#allocation5], 4294967168 }
 0x2a2   :  { %906 = vsyncpa [#allocation3], 1 }
 0x2a3   :  { %907 = vsyncpa [#allocation5], 1 }

</bundles_post_ra>
